<compile_context>
chip_gen: v6e
topology: v6e:2x2x1
jax: 0.10.0
libtpu: 0.0.40
codegen_flags: <defaults>
</compile_context>

<pallas_src>
import math

import jax
import jax.numpy as jnp
from jax import lax
from jax.experimental import pallas as pl
from jax.experimental.pallas import tpu as pltpu


# ---------------------------------------------------------------------------
# kernels
# ---------------------------------------------------------------------------
def _transpose_kernel(x_ref, o_ref):
    """x_ref: (tb, tm, tn) -> o_ref: (tb, tn, tm).

    tb == 1  : single clean 2-D minor-dim transpose (one XLU pass).
    tb  > 1  : batch-blocked small-plane case; loop over the planes of the block.
               Both HBM blocks are contiguous, so the writeback DMA is full width
               regardless of tm/tn.
    """
    tb = x_ref.shape[0]
    if tb == 1:
        o_ref[0] = x_ref[0].T
    else:
        # TODO(synk): when tm < 128 the transposed value is lane-padded in VMEM
        # (store density ~tm/128).  A lane-compacting transpose+flatten would densify
        # the vst path but does not reliably lower in Mosaic today, so we keep the
        # plain per-plane transpose (still fully hidden for tm >= ~64).
        def body(b, carry):
            o_ref[b] = x_ref[b].T
            return carry

        lax.fori_loop(0, tb, body, 0)


def _copy_kernel(x_ref, o_ref):
    """Pure copy: the permutation is expressed entirely by the BlockSpec index maps."""
    o_ref[...] = x_ref[...]


# ---------------------------------------------------------------------------
# permutation normalization
# ---------------------------------------------------------------------------
def _normalize(shape, dims):
    """Drop size-1 axes and merge runs of input axes that stay adjacent & in order.

    Returns (norm_in_shape, norm_dims) such that
        x.reshape(norm_in_shape).transpose(norm_dims).reshape(out_shape)
    equals x.permute(dims).
    """
    kept = [d for d in dims if shape[d] != 1]            # output order, no size-1 axes
    if not kept:
        return (), ()
    kept_in_order = sorted(kept)
    remap = {d: i for i, d in enumerate(kept_in_order)}
    shape2 = [shape[d] for d in kept_in_order]           # squeezed input shape
    dims2 = [remap[d] for d in kept]                      # squeezed permutation

    # Group runs of consecutive input axes that appear consecutively in the output.
    groups = []                                           # in output order
    for d in dims2:
        if groups and d == groups[-1][-1] + 1:
            groups[-1].append(d)
        else:
            groups.append([d])

    order = sorted(range(len(groups)), key=lambda g: groups[g][0])   # input order
    in_shape = tuple(math.prod(shape2[d] for d in groups[g]) for g in order)
    pos_in_input = {g: i for i, g in enumerate(order)}
    norm_dims = tuple(pos_in_input[g] for g in range(len(groups)))
    return in_shape, norm_dims


# ---------------------------------------------------------------------------
# tile selection helpers (byte-based, dtype aware)
# ---------------------------------------------------------------------------
_STEP_BYTES = 4 << 20          # ~4 MiB moved per grid step per array
_SMALL_PLANE_BYTES = 1 << 20   # below this, block over the batch dim instead of (m, n)


def _dim_target(itemsize, tile_bytes=_STEP_BYTES):
    """Per-dim element target so that a square tile is roughly `tile_bytes`."""
    elems = max(tile_bytes // max(itemsize, 1), 128 * 128)
    t = 128
    while (2 * t) * (2 * t) <= elems and (2 * t) <= 4096:
        t *= 2
    return t


def _lane_tile(dim, target):
    """Tile for a dim that is the lane (last) dim of the input and/or output block.

    Full extent if small; otherwise the largest 128-multiple divisor <= target;
    otherwise a fixed 128-multiple (the ragged edge is handled by a cdiv grid and
    Pallas masking) so a huge non-divisible dim can never blow past VMEM.
    """
    if dim <= target:
        return dim
    t = (target // 128) * 128
    while t >= 128:
        if dim % t == 0:
            return t
        t -= 128
    return max((target // 128) * 128, 128)


def _compiler_params(n_grid_axes, block_bytes):
    # double-buffered input + output blocks plus slack; stays well under v7x's
    # 64 MiB physical VMEM (block_bytes is capped at ~4 MiB by construction).
    limit = int(min(max(4 * block_bytes + (4 << 20), 32 << 20), 56 << 20))
    return pltpu.CompilerParams(
        dimension_semantics=("parallel",) * n_grid_axes,
        vmem_limit_bytes=limit,
    )


# ---------------------------------------------------------------------------
# public API
# ---------------------------------------------------------------------------
def pallas_permute(x: jax.Array, dims, *, step_bytes: int = _STEP_BYTES) -> jax.Array:
    ndim = x.ndim
    dims = tuple(int(d) % ndim for d in dims)
    assert sorted(dims) == list(range(ndim)), "dims must be a permutation of the axes"
    out_shape = tuple(x.shape[d] for d in dims)

    if x.size == 0:
        return jnp.transpose(x, dims)

    in_shape, norm_dims = _normalize(x.shape, dims)
    k = len(norm_dims)
    itemsize = x.dtype.itemsize

    # ---- 1. pure layout change: no data movement required --------------------
    if k <= 1:
        return x.reshape(out_shape)

    # ---- 2. batch dims + swap of the last two normalized axes ---------------
    if norm_dims == tuple(range(k - 2)) + (k - 1, k - 2):
        batch = int(math.prod(in_shape[:-2])) if k > 2 else 1
        m, n = in_shape[-2], in_shape[-1]
        xb = x.reshape(batch, m, n)

        plane_bytes = m * n * itemsize
        if plane_bytes <= _SMALL_PLANE_BYTES:
            # Small planes: move several full (m, n) planes per grid step so the
            # per-step overhead is amortized and both DMAs are long & contiguous.
            tm, tn = m, n
            tb = int(min(batch, max(1, step_bytes // plane_bytes)))
        else:
            # Large planes: classic tiled 2-D transpose.  Each tile dim is the lane
            # dim of one side, so both are full extents or multiples of 128.
            tb = 1
            tgt = _dim_target(itemsize, step_bytes)
            tm = _lane_tile(m, tgt)
            tn = _lane_tile(n, tgt)

        # Grid order note: innermost axis walks the input's column tiles; swapping
        # the i/j roles is a cheap A/B sweep worth a few % on mem-bound copies.
        grid = (pl.cdiv(batch, tb), pl.cdiv(m, tm), pl.cdiv(n, tn))
        block_bytes = tb * tm * tn * itemsize

        out = pl.pallas_call(
            _transpose_kernel,
            out_shape=jax.ShapeDtypeStruct((batch, n, m), x.dtype),
            grid=grid,
            in_specs=[pl.BlockSpec((tb, tm, tn), lambda b, i, j: (b, i, j))],
            out_specs=pl.BlockSpec((tb, tn, tm), lambda b, i, j: (b, j, i)),
            compiler_params=_compiler_params(len(grid), block_bytes),
        )(xb)
        return out.reshape(out_shape)

    # ---- 3. last normalized axis unchanged: pure DMA shuffle ----------------
    if norm_dims[-1] == k - 1:
        n = in_shape[-1]
        a = norm_dims[k - 2]                 # input axis feeding the output sublane dim
        sa = in_shape[a]
        out_pos = {ax: o for o, ax in enumerate(norm_dims)}   # input axis -> output pos

        lane_target = max(128, step_bytes // (8 * itemsize))
        tn = _lane_tile(n, lane_target)
        rows = max(8, step_bytes // max(tn * itemsize, 1))
        ba = sa if sa <= rows else max(8, (rows // 8) * 8)

        in_block = [None] * k                # None == size-1, squeezed from kernel refs
        in_block[a] = ba
        in_block[k - 1] = tn
        out_block = [None] * k
        out_block[k - 2] = ba
        out_block[k - 1] = tn

        # One grid axis per leading *output* axis (so consecutive steps write
        # consecutive output regions), plus the lane-tile axis innermost.
        grid = tuple(
            (pl.cdiv(sa, ba) if norm_dims[o] == a else in_shape[norm_dims[o]])
            for o in range(k - 1)
        ) + (pl.cdiv(n, tn),)

        def in_index_map(*g):
            return tuple(g[out_pos[ax]] for ax in range(k))

        def out_index_map(*g):
            return tuple(g)

        out_norm_shape = tuple(in_shape[d] for d in norm_dims)
        block_bytes = ba * tn * itemsize

        out = pl.pallas_call(
            _copy_kernel,
            out_shape=jax.ShapeDtypeStruct(out_norm_shape, x.dtype),
            grid=grid,
            in_specs=[pl.BlockSpec(tuple(in_block), in_index_map)],
            out_specs=pl.BlockSpec(tuple(out_block), out_index_map),
            compiler_params=_compiler_params(len(grid), block_bytes),
        )(x.reshape(in_shape))
        return out.reshape(out_shape)

    # ---- 4. exotic permutations ----------------------------------------------
    # TODO(synk): permutations whose output lane dim comes from a non-minor input axis
    # (e.g. full reversals like (2,1,0)) need a lane-crossing relayout; we delegate to
    # XLA's already-tiled transpose instead of a single whole-array VMEM block.
    return jnp.transpose(x, dims)


class Permute:
    """Pallas-TPU equivalent of the PyTorch `Permute(*dims)` module."""

    def __init__(self, *dims):
        self.dims = dims

    def __call__(self, x):
        return pallas_permute(x, self.dims)


# ---------------------------------------------------------------------------
# demo / correctness check
# ---------------------------------------------------------------------------
if __name__ == "__main__":
    key = jax.random.PRNGKey(0)

    cases = [
        ((2, 8, 16, 16), (0, 2, 3, 1)),   # NCHW -> NHWC       : batch-blocked trailing swap
        ((2, 8, 16, 16), (2, 3, 0, 1)),   # spatial-major      : trailing swap (merged axes)
        ((32, 128), (1, 0)),              # plain 2-D transpose
        ((2, 384, 768), (0, 2, 1)),       # (N, C, T)->(N, T, C): tiled 2-D transpose path
        ((2, 8, 16, 16), (1, 0, 2, 3)),   # leading swap        : tiled pure-copy kernel
        ((3, 4, 8, 32), (0, 2, 1, 3)),    # middle swap         : tiled pure-copy kernel
        ((2, 1, 8, 4), (0, 2, 1, 3)),     # size-1 axis move    : pure reshape
        ((2, 3, 4, 5), (3, 2, 1, 0)),     # full reversal       : XLA fallback (TODO)
    ]

    keys = jax.random.split(key, len(cases))
    for (shape, dims), k in zip(cases, keys):
        x = jax.random.normal(k, shape, dtype=jnp.float32)
        mod = Permute(*dims)
        out = jax.block_until_ready(mod(x))
        ref = jnp.transpose(x, dims)
        assert out.shape == ref.shape, (dims, out.shape, ref.shape)
        assert bool(jnp.array_equal(out, ref)), f"mismatch for shape={shape} dims={dims}"

    print("KERNEL_OK")
</pallas_src>

<mosaic_0001>
module attributes {stable_mosaic.version = 11 : i64} {
  func.func @_transpose_kernel(%arg0: i32, %arg1: i32, %arg2: i32, %arg3: memref<2x8x256xf32, #tpu.memory_space<vmem>>, %arg4: memref<2x256x8xf32, #tpu.memory_space<vmem>>) attributes {dimension_semantics = [#tpu.dimension_semantics<parallel>, #tpu.dimension_semantics<parallel>, #tpu.dimension_semantics<parallel>], iteration_bounds = array<i64: 1, 1, 1>, scalar_prefetch = 0 : i64, scratch_operands = 0 : i64, tpu.core_type = #tpu.core_type<tc>, window_params = [{transform_indices = @transform_0, window_bounds = array<i64: 2, 8, 256>}, {transform_indices = @transform_1, window_bounds = array<i64: 2, 256, 8>}]} {
    %c0_i32 = arith.constant 0 : i32
    %c2_i32 = arith.constant 2 : i32
    %0 = arith.addi %c0_i32, %c2_i32 : i32
    %c1_i32 = arith.constant 1 : i32
    scf.for %arg5 = %c0_i32 to %0 step %c1_i32  : i32 {
      %1 = arith.index_cast %arg5 : i32 to index
      %c0 = arith.constant 0 : index
      %c0_1 = arith.constant 0 : index
      %2 = vector.load %arg3[%1, %c0, %c0_1] : memref<2x8x256xf32, #tpu.memory_space<vmem>>, vector<1x8x256xf32>
      %3 = vector.shape_cast %2 : vector<1x8x256xf32> to vector<8x256xf32>
      %4 = tpu.transpose %3, [1, 0] : vector<8x256xf32> -> vector<256x8xf32>
      %5 = arith.index_cast %arg5 : i32 to index
      %c0_2 = arith.constant 0 : index
      %c0_3 = arith.constant 0 : index
      %6 = vector.load %arg4[%5, %c0_2, %c0_3] : memref<2x256x8xf32, #tpu.memory_space<vmem>>, vector<1x256x8xf32>
      %7 = vector.shape_cast %6 : vector<1x256x8xf32> to vector<256x8xf32>
      %8 = vector.shape_cast %4 : vector<256x8xf32> to vector<1x256x8xf32>
      tpu.vector_store %arg4[%5, %c0_2, %c0_3], %8 {strides = array<i32>} : memref<2x256x8xf32, #tpu.memory_space<vmem>>, vector<1x256x8xf32>,
    }
    %c2_i32_0 = arith.constant 2 : i32
    return
  }
  func.func @transform_0(%arg0: i32, %arg1: i32, %arg2: i32) -> (i32, i32, i32) {
    %c0_i32 = arith.constant 0 : i32
    return %arg0, %arg1, %arg2 : i32, i32, i32
  }
  func.func @transform_1(%arg0: i32, %arg1: i32, %arg2: i32) -> (i32, i32, i32) {
    %c0_i32 = arith.constant 0 : i32
    return %arg0, %arg2, %arg1 : i32, i32, i32
  }
}

</mosaic_0001>

<bundles_post_ra>
// kernel: tpu_custom_call.1
= control target key start
LH: loop header
LB: loop body
LE: loop exit
PB: predicated region body
PF: predicated region fallthrough
CT: control target
= control target key end

     0   :  { %6 = vsyncpa [#allocation3], 0  ;;  %s192_s6 = smov [#allocation2]   ;;  %s287_s0 = inlined_call_operand.hbm [shape: f32[2,8,256], index: 0, kind: input, shape index: {}]   ;;  %s288_s1 = inlined_call_operand.vmem [shape: f32[2,256,8], index: 1, kind: output, shape index: {}]  }
   0x1   :  { %s12_s7 = sshll.u32 %s192_s6, 4  ;;  %s13_s7 = int_to_ptr.vmem [resolvable:$true] %s12_s7 }
   0x2   :  { %s170_s8 = scalar_lea.vmem %s13_s7, 512  ;;  %p175_p1 = scmp.lt.s32.totalorder %s13_s7, %s13_s7 }
   0x3   :  { %p171_p0 = scmp.ne.s32.totalorder %s13_s7, %s170_s8  ;;  %p176_p2 = scmp.lt.s32.totalorder %s170_s8, %s170_s8 }
   0x5   :  { %p177_p3 = por %p176_p2, %p175_p1 }
   0x7   :  { %p178_p4 = pnand %p177_p3, %p171_p0 }
   0x9   :  { %181 = shalt.err (!%p178_p4)
}
   0xa   :  { %s193_s9 = smov 256   ;;  %s194_s10 = smov 16  }
   0xb   :  { %18 = dma.hbm_to_vmem [thread:$0]  %s287_s0, 512, %s13_s7, [#allocation3], %s193_s9, %s193_s9, %s194_s10  }
   0xc   :  { %186 = dma.done.wait [#allocation3], 512  }
   0xd   :  { %187 = vsyncadd [#allocation3], 4294966784  ;;  %s208_s13 = smov 0  }
   0xe LB: > { %s149_s14 = sshll.u32 %s190_s13, 4  ;;  %s148_s16 = sshll.u32 %s190_s13, 8  ;;  %vm99_vm0 = vcmask 64512   ;;  %s190_s13 = sphi %s208_s13, %s27_s13  }
   0xf   : > { %s30_s15 = scalar_lea.vmem [#allocation2], %s149_s14  ;;  %s218_s18 = scalar_lea.vmem %s288_s1, %s148_s16 }
  0x10   : > { %v31_v0 = vld [vmem:[%s30_s15] sm:$0xff]  ;;  %v32_v1 = vld [vmem:[%s30_s15 + $0x8] sm:$0xff]  ;;  %s27_s13 = sadd.s32 1, %s190_s13  }
  0x11   : > { %33 = vxpose.xlu0.b32.start.end [1/1] (short) %v31_v0, 128  ;;  %p24_p5 = scmp.ge.s32.totalorder %s27_s13, 2  }
  0x4e   : > { %65 = vxpose.xlu0.b32.start.end [1/1] (short) %v32_v1, 128 }
  0x8d   : > { %v49_v2 = vpop.trf.xlu0 }
  0x8e   : > { %100 = vst.msk [vmem:[%s218_s18] sm:$0xff] %vm99_vm0, %v49_v2 }
  0x91   : > { %v50_v3 = vpop.trf.xlu0 }
  0x92   : > { %101 = vst.msk [vmem:[%s218_s18 + $0x8] sm:$0xff] %vm99_vm0, %v50_v3 }
  0x95   : > { %v51_v4 = vpop.trf.xlu0 }
  0x96   : > { %102 = vst.msk [vmem:[%s218_s18 + $0x10] sm:$0xff] %vm99_vm0, %v51_v4 }
  0x99   : > { %v52_v5 = vpop.trf.xlu0 }
  0x9a   : > { %103 = vst.msk [vmem:[%s218_s18 + $0x18] sm:$0xff] %vm99_vm0, %v52_v5 }
  0x9d   : > { %v53_v6 = vpop.trf.xlu0 }
  0x9e   : > { %104 = vst.msk [vmem:[%s218_s18 + $0x20] sm:$0xff] %vm99_vm0, %v53_v6 }
  0xa1   : > { %v54_v7 = vpop.trf.xlu0 }
  0xa2   : > { %105 = vst.msk [vmem:[%s218_s18 + $0x28] sm:$0xff] %vm99_vm0, %v54_v7 }
  0xa5   : > { %v55_v8 = vpop.trf.xlu0 }
  0xa6   : > { %106 = vst.msk [vmem:[%s218_s18 + $0x30] sm:$0xff] %vm99_vm0, %v55_v8 }
  0xa9   : > { %v56_v9 = vpop.trf.xlu0 }
  0xaa   : > { %107 = vst.msk [vmem:[%s218_s18 + $0x38] sm:$0xff] %vm99_vm0, %v56_v9 }
  0xad   : > { %v57_v10 = vpop.trf.xlu0 }
  0xae   : > { %108 = vst.msk [vmem:[%s218_s18 + $0x40] sm:$0xff] %vm99_vm0, %v57_v10 }
  0xb1   : > { %v58_v11 = vpop.trf.xlu0 }
  0xb2   : > { %109 = vst.msk [vmem:[%s218_s18 + $0x48] sm:$0xff] %vm99_vm0, %v58_v11 }
  0xb5   : > { %v59_v12 = vpop.trf.xlu0 }
  0xb6   : > { %110 = vst.msk [vmem:[%s218_s18 + $0x50] sm:$0xff] %vm99_vm0, %v59_v12 }
  0xb9   : > { %v60_v13 = vpop.trf.xlu0 }
  0xba   : > { %111 = vst.msk [vmem:[%s218_s18 + $0x58] sm:$0xff] %vm99_vm0, %v60_v13 }
  0xbd   : > { %v61_v14 = vpop.trf.xlu0 }
  0xbe   : > { %112 = vst.msk [vmem:[%s218_s18 + $0x60] sm:$0xff] %vm99_vm0, %v61_v14 }
  0xc1   : > { %v62_v15 = vpop.trf.xlu0 }
  0xc2   : > { %113 = vst.msk [vmem:[%s218_s18 + $0x68] sm:$0xff] %vm99_vm0, %v62_v15 }
  0xc5   : > { %v63_v16 = vpop.trf.xlu0 }
  0xc6   : > { %114 = vst.msk [vmem:[%s218_s18 + $0x70] sm:$0xff] %vm99_vm0, %v63_v16 }
  0xc9   : > { %v64_v17 = vpop.trf.xlu0 }
  0xca   : > { %115 = vst.msk [vmem:[%s218_s18 + $0x78] sm:$0xff] %vm99_vm0, %v64_v17 }
  0xcd   : > { %v81_v18 = vpop.trf.xlu0 }
  0xce   : > { %116 = vst.msk [vmem:[%s218_s18 + $0x80] sm:$0xff] %vm99_vm0, %v81_v18 }
  0xd1   : > { %v82_v19 = vpop.trf.xlu0 }
  0xd2   : > { %117 = vst.msk [vmem:[%s218_s18 + $0x88] sm:$0xff] %vm99_vm0, %v82_v19 }
  0xd5   : > { %v83_v20 = vpop.trf.xlu0 }
  0xd6   : > { %118 = vst.msk [vmem:[%s218_s18 + $0x90] sm:$0xff] %vm99_vm0, %v83_v20 }
  0xd9   : > { %v84_v21 = vpop.trf.xlu0 }
  0xda   : > { %119 = vst.msk [vmem:[%s218_s18 + $0x98] sm:$0xff] %vm99_vm0, %v84_v21 }
  0xdd   : > { %v85_v22 = vpop.trf.xlu0 }
  0xde   : > { %120 = vst.msk [vmem:[%s218_s18 + $0xa0] sm:$0xff] %vm99_vm0, %v85_v22 }
  0xe1   : > { %v86_v23 = vpop.trf.xlu0 }
  0xe2   : > { %121 = vst.msk [vmem:[%s218_s18 + $0xa8] sm:$0xff] %vm99_vm0, %v86_v23 }
  0xe5   : > { %v87_v24 = vpop.trf.xlu0 }
  0xe6   : > { %122 = vst.msk [vmem:[%s218_s18 + $0xb0] sm:$0xff] %vm99_vm0, %v87_v24 }
  0xe9   : > { %v88_v25 = vpop.trf.xlu0 }
  0xea   : > { %123 = vst.msk [vmem:[%s218_s18 + $0xb8] sm:$0xff] %vm99_vm0, %v88_v25 }
  0xed   : > { %v89_v26 = vpop.trf.xlu0 }
  0xee   : > { %124 = vst.msk [vmem:[%s218_s18 + $0xc0] sm:$0xff] %vm99_vm0, %v89_v26 }
  0xf1   : > { %v90_v27 = vpop.trf.xlu0 }
  0xf2   : > { %125 = vst.msk [vmem:[%s218_s18 + $0xc8] sm:$0xff] %vm99_vm0, %v90_v27 }
  0xf5   : > { %v91_v28 = vpop.trf.xlu0 }
  0xf6   : > { %126 = vst.msk [vmem:[%s218_s18 + $0xd0] sm:$0xff] %vm99_vm0, %v91_v28 }
  0xf9   : > { %v92_v29 = vpop.trf.xlu0 }
  0xfa   : > { %127 = vst.msk [vmem:[%s218_s18 + $0xd8] sm:$0xff] %vm99_vm0, %v92_v29 }
  0xfd   : > { %v93_v30 = vpop.trf.xlu0 }
  0xfe   : > { %128 = vst.msk [vmem:[%s218_s18 + $0xe0] sm:$0xff] %vm99_vm0, %v93_v30 }
 0x101   : > { %v94_v31 = vpop.trf.xlu0 }
 0x102   : > { %129 = vst.msk [vmem:[%s218_s18 + $0xe8] sm:$0xff] %vm99_vm0, %v94_v31 }
 0x105   : > { %v95_v32 = vpop.trf.xlu0 }
 0x106   : > { %130 = vst.msk [vmem:[%s218_s18 + $0xf0] sm:$0xff] %vm99_vm0, %v95_v32  ;;  %26 = sbr.rel (!%p24_p5) target bundleno = 14 (0xe), region = 37 }
 0x109   : > { %v96_v33 = vpop.trf.xlu0 }
 0x10a   : > { %131 = vst.msk [vmem:[%s218_s18 + $0xf8] sm:$0xff] %vm99_vm0, %v96_v33 }
 0x10b   :  { %136 = vsyncpa [#allocation3], 1 }

</bundles_post_ra>
